<compile_context>
chip_gen: v7x
topology: tpu7x:2x2x1
jax: 0.10.0
libtpu: 0.0.40
codegen_flags: <defaults>
</compile_context>

<pallas_src>
import functools

import jax
import jax.numpy as jnp
import numpy as np
from jax import lax
from jax.experimental import pallas as pl
from jax.experimental.pallas import tpu as pltpu

BN_EPS = 1e-5


# ----------------------------------------------------------------------------
# One-time constant packing (hoisted out of the forward pass)
# ----------------------------------------------------------------------------
def pack_convt_weights(w_np, W, Cin, Cout):
    """Pack ConvTranspose2d weights (Cin, Cout, 3, 3) into one stacked banded
    matrix [Wa; Wb] of shape (2*W*Cin, 2*2*W*Cout).

    ConvT(stride=2, pad=1, out_pad=1): out[2m+py, 2k+px] gets contributions
      py=0 -> (ky=1, iy=m)        ; py=1 -> (ky=0, iy=m+1), (ky=2, iy=m)
      px=0 -> (kx=1, ix=k)        ; px=1 -> (kx=0, ix=k+1), (kx=2, ix=k)
    Rows are (k', ci) — the first W*Cin rows multiply input row m, the last
    W*Cin rows multiply input row m+1.  Columns are (py, k, px, co).
    """
    OC = 2 * 2 * W * Cout
    Wa = np.zeros((W * Cin, OC), np.float32)
    Wb = np.zeros((W * Cin, OC), np.float32)
    y_taps = {0: [(1, 0)], 1: [(0, 1), (2, 0)]}   # (ky, src): src 0 -> row m, 1 -> row m+1
    x_taps = {0: [(1, 0)], 1: [(0, 1), (2, 0)]}   # (kx, dk):  column k' = k + dk
    for py in (0, 1):
        for px in (0, 1):
            for ky, src in y_taps[py]:
                for kx, dk in x_taps[px]:
                    tgt = Wa if src == 0 else Wb
                    for k in range(W):
                        kp = k + dk
                        if kp >= W:           # ix out of range -> no contribution
                            continue
                        r0 = kp * Cin
                        c0 = py * (W * 2 * Cout) + k * (2 * Cout) + px * Cout
                        tgt[r0:r0 + Cin, c0:c0 + Cout] += w_np[:, :, ky, kx]
    return np.concatenate([Wa, Wb], axis=0)       # (2*W*Cin, OC)


def make_pool_factored(OC, Cout, NH):
    """Factored per-channel pool + broadcast (replaces the dense OC x OC pool).

    pf (OC, Cout): (v @ pf)[j] = mean over rows/positions of channel j
                   (the 1/(NH * OC/Cout) scale is baked in).
    bc (Cout, OC): (u @ bc)[c] = u[c % Cout]  (broadcast back to columns).
    """
    G = OC // Cout
    c = np.arange(OC)
    j = np.arange(Cout)
    pf = ((c[:, None] % Cout) == j[None, :]).astype(np.float32) / float(NH * G)
    bc = (j[:, None] == (c[None, :] % Cout)).astype(np.float32)
    return pf, bc


def tile_channels(v_np, OC, Cout):
    """Tile a per-channel (Cout,) vector to the (1, OC) column layout (py,k,px,co)."""
    return np.tile(np.asarray(v_np, np.float32), OC // Cout)[None, :]


def prepare_params(params, N, H, W, Cin, Cout, compute_dtype=jnp.bfloat16):
    """One-time parameter preprocessing (host packing + device upload)."""
    w, b, gamma, beta, alpha = params
    del b  # conv bias cancels exactly under training-mode BatchNorm
    OC = 2 * 2 * W * Cout
    NH = N * H
    Wab = pack_convt_weights(np.asarray(w, np.float32), W, Cin, Cout)
    pf, bc = make_pool_factored(OC, Cout, NH)
    return dict(
        dims=(N, H, W, Cin, Cout),
        compute_dtype=compute_dtype,
        w=jnp.asarray(Wab).astype(compute_dtype),        # (2*W*Cin, OC)
        pf=jnp.asarray(pf),                              # (OC, Cout)  f32
        bc=jnp.asarray(bc),                              # (Cout, OC)  f32
        gamma=jnp.asarray(tile_channels(gamma, OC, Cout)),
        beta=jnp.asarray(tile_channels(beta, OC, Cout)),
        alpha=jnp.asarray(alpha, jnp.float32).reshape(1),
    )


# ----------------------------------------------------------------------------
# Kernel
# ----------------------------------------------------------------------------
def up_kernel(x_ref, w_ref, pf_ref, bc_ref, g_ref, be_ref, a_ref, out_ref,
              xd_ref, *, H, compute_dtype):
    nh, wc = x_ref.shape

    # "Next input row" view: xd[r] = x[r+1], zero at each image's last row
    # (bottom halo of the stride-2 transposed conv).  Plain sublane slice
    # copies (vld/vst slots) + one VPU select replace the old O((N*H)^2)
    # shift-matrix matmul.  (pltpu.roll(x, nh-1, axis=0) is the one-op variant.)
    xd_ref[pl.ds(0, nh - 1), :] = x_ref[pl.ds(1, nh - 1), :]
    xd_ref[pl.ds(nh - 1, 1), :] = jnp.zeros((1, wc), jnp.float32)
    row = lax.broadcasted_iota(jnp.int32, (nh, 1), 0)
    xd = jnp.where((row % H) == (H - 1), 0.0, xd_ref[...])

    # ConvTranspose2d(3, stride=2, pad=1, out_pad=1) as ONE fused banded matmul:
    # [x | xd] (NH, 2*W*Cin) @ [Wa; Wb] (2*W*Cin, OC); K = 2*W*Cin = 256 fills
    # the v6e/v7x MXU.  Operands in compute_dtype (bf16 for full MXU rate),
    # accumulation in f32.  Output columns are (parity_y, k, parity_x, c_out).
    xcat = jnp.concatenate([x_ref[...], xd], axis=1).astype(compute_dtype)
    y = jnp.dot(xcat, w_ref[...], preferred_element_type=jnp.float32)
    # Conv bias intentionally omitted: a per-channel constant shift cancels
    # exactly in training-mode BatchNorm (mean and variance both unaffected).

    # Training-mode BatchNorm2d stats: reduce over rows FIRST (XLU sums), then
    # pool per channel and broadcast back to the OC columns with tiny factored
    # matmuls (1,OC)@(OC,Cout)@(Cout,OC).  pf bakes in 1/(NH*(OC/Cout)).
    sy = jnp.sum(y, axis=0, keepdims=True)                 # (1, OC)
    sy2 = jnp.sum(y * y, axis=0, keepdims=True)            # (1, OC)
    mu = jnp.dot(jnp.dot(sy, pf_ref[...], preferred_element_type=jnp.float32),
                 bc_ref[...], preferred_element_type=jnp.float32)      # (1, OC)
    ex2 = jnp.dot(jnp.dot(sy2, pf_ref[...], preferred_element_type=jnp.float32),
                  bc_ref[...], preferred_element_type=jnp.float32)     # (1, OC)
    var = ex2 - mu * mu
    yn = (y - mu) * lax.rsqrt(var + BN_EPS)
    yn = yn * g_ref[...] + be_ref[...]                     # BN affine (pre-tiled)

    # PReLU (single shared parameter, SMEM scalar).
    a = a_ref[0]
    out_ref[...] = jnp.where(yn > 0, yn, a * yn).astype(out_ref.dtype)


# ----------------------------------------------------------------------------
# Wrapper
# ----------------------------------------------------------------------------
def up_forward(x_nhwc, packed):
    """x_nhwc: (N, H, W, Cin) f32; packed: output of prepare_params.
    Returns NHWC (N, 2H, 2W, Cout) f32."""
    N, H, W, Cin, Cout = packed["dims"]
    NH, WC = N * H, W * Cin
    OC = 2 * 2 * W * Cout

    x2 = x_nhwc.reshape(NH, WC)          # pure reshape -> lane-dense (N*H, W*Cin)

    vmem = pl.BlockSpec(memory_space=pltpu.MemorySpace.VMEM)
    smem = pl.BlockSpec(memory_space=pltpu.MemorySpace.SMEM)
    kernel = functools.partial(up_kernel, H=H, compute_dtype=packed["compute_dtype"])

    y = pl.pallas_call(
        kernel,
        out_shape=jax.ShapeDtypeStruct((NH, OC), jnp.float32),
        in_specs=[vmem,                   # x       (NH, W*Cin)        f32
                  vmem,                   # [Wa;Wb] (2*W*Cin, OC)      compute dtype
                  vmem, vmem,             # pool / broadcast factors   f32
                  vmem, vmem,             # BN gamma / beta (1, OC)    f32
                  smem],                  # PReLU alpha (1,)
        out_specs=vmem,
        scratch_shapes=[pltpu.VMEM((NH, WC), jnp.float32)],   # shifted-row buffer
    )(x2, packed["w"], packed["pf"], packed["bc"],
      packed["gamma"], packed["beta"], packed["alpha"])

    # Depth-to-space back to NHWC: pure reshapes, no transpose
    # (rows are (n, m), columns are (py, k, px, co)).
    return y.reshape(N, H, 2, W, 2, Cout).reshape(N, 2 * H, 2 * W, Cout)


# ----------------------------------------------------------------------------
# Parameters and pure-JAX reference (independent formulation for checking)
# ----------------------------------------------------------------------------
def init_params(key, Cin, Cout):
    k1, k2, k3, k4 = jax.random.split(key, 4)
    w = jax.random.normal(k1, (Cin, Cout, 3, 3), jnp.float32) * 0.1   # ConvT2d weight layout
    b = jax.random.normal(k2, (Cout,), jnp.float32) * 0.1
    gamma = 1.0 + 0.1 * jax.random.normal(k3, (Cout,), jnp.float32)   # BatchNorm2d weight
    beta = 0.1 * jax.random.normal(k4, (Cout,), jnp.float32)          # BatchNorm2d bias
    alpha = jnp.full((1,), 0.25, jnp.float32)                         # PReLU default init
    return (w, b, gamma, beta, alpha)


def up_reference(x_nhwc, params):
    """ConvTranspose2d(3,2,1,1) via zero-dilation + flipped-kernel conv, then
    training-mode BN and PReLU (pure JAX, f32)."""
    w, b, gamma, beta, alpha = params
    N, H, W, Cin = x_nhwc.shape
    Cout = w.shape[1]
    Ho, Wo = 2 * H, 2 * W
    z = jnp.zeros((N, 2 * H - 1, 2 * W - 1, Cin), jnp.float32)
    z = z.at[:, ::2, ::2, :].set(x_nhwc)
    zp = jnp.pad(z, ((0, 0), (1, 2), (1, 2), (0, 0)))
    y = jnp.zeros((N, Ho, Wo, Cout), jnp.float32)
    for dy in range(3):
        for dx in range(3):
            y = y + jnp.einsum('nhwi,io->nhwo',
                               zp[:, dy:dy + Ho, dx:dx + Wo, :],
                               w[:, :, 2 - dy, 2 - dx])
    y = y + b
    mu = y.mean(axis=(0, 1, 2))
    var = ((y - mu) ** 2).mean(axis=(0, 1, 2))          # biased (training-mode) variance
    y = (y - mu) * lax.rsqrt(var + BN_EPS) * gamma + beta
    y = jnp.where(y > 0, y, alpha[0] * y)
    return y


if __name__ == "__main__":
    N, Cin, Cout, H, W = 2, 8, 4, 16, 16      # torch-equivalent input: [2, 8, 16, 16] NCHW
    key = jax.random.PRNGKey(0)
    kx, kp = jax.random.split(key)
    x = jax.random.normal(kx, (N, H, W, Cin), jnp.float32)    # NHWC in this script
    params = init_params(kp, Cin, Cout)
    ref = up_reference(x, params)

    # f32 MXU operands: tight check of the conv/BN/PReLU decomposition.
    packed_f32 = prepare_params(params, N, H, W, Cin, Cout, compute_dtype=jnp.float32)
    out_f32 = jax.block_until_ready(up_forward(x, packed_f32))
    np.testing.assert_allclose(np.asarray(out_f32), np.asarray(ref), rtol=2e-3, atol=2e-3)

    # bf16 MXU operands (full-rate MXU on v5e/v6e/v7x); f32 accumulation, f32 BN.
    packed_bf16 = prepare_params(params, N, H, W, Cin, Cout, compute_dtype=jnp.bfloat16)
    out_bf16 = jax.block_until_ready(up_forward(x, packed_bf16))
    np.testing.assert_allclose(np.asarray(out_bf16), np.asarray(ref), rtol=2e-2, atol=2e-2)

    print("KERNEL_OK")
</pallas_src>

<mosaic_0001>
module attributes {stable_mosaic.version = 11 : i64} {
  func.func @up_kernel(%arg0: memref<32x128xf32, #tpu.memory_space<vmem>>, %arg1: memref<256x256xf32, #tpu.memory_space<vmem>>, %arg2: memref<256x4xf32, #tpu.memory_space<vmem>>, %arg3: memref<4x256xf32, #tpu.memory_space<vmem>>, %arg4: memref<1x256xf32, #tpu.memory_space<vmem>>, %arg5: memref<1x256xf32, #tpu.memory_space<vmem>>, %arg6: memref<1xf32, #tpu.memory_space<smem>>, %arg7: memref<32x256xf32, #tpu.memory_space<vmem>>, %arg8: memref<32x128xf32, #tpu.memory_space<vmem>>) attributes {dimension_semantics = [], scalar_prefetch = 0 : i64, scratch_operands = 1 : i64, tpu.core_type = #tpu.core_type<tc>} {
    %c1 = arith.constant 1 : index
    %c0 = arith.constant 0 : index
    %0 = vector.load %arg0[%c1, %c0] : memref<32x128xf32, #tpu.memory_space<vmem>>, vector<31x128xf32>
    %c0_0 = arith.constant 0 : index
    %c0_1 = arith.constant 0 : index
    %1 = vector.load %arg8[%c0_0, %c0_1] : memref<32x128xf32, #tpu.memory_space<vmem>>, vector<31x128xf32>
    tpu.vector_store %arg8[%c0_0, %c0_1], %0 {strides = array<i32>} : memref<32x128xf32, #tpu.memory_space<vmem>>, vector<31x128xf32>,
    %cst = arith.constant 0.000000e+00 : f32
    %2 = vector.broadcast %cst : f32 to vector<1x128xf32>
    %c31 = arith.constant 31 : index
    %c0_2 = arith.constant 0 : index
    %3 = vector.load %arg8[%c31, %c0_2] : memref<32x128xf32, #tpu.memory_space<vmem>>, vector<1x128xf32>
    tpu.vector_store %arg8[%c31, %c0_2], %2 {strides = array<i32>} : memref<32x128xf32, #tpu.memory_space<vmem>>, vector<1x128xf32>,
    %4 = tpu.iota {dimensions = array<i32: 0>} : vector<32x1xi32>
    %c16_i32 = arith.constant 16 : i32
    %c0_i32 = arith.constant 0 : i32
    %5 = arith.cmpi eq, %c16_i32, %c0_i32 : i32
    %c1_i32 = arith.constant 1 : i32
    %6 = arith.select %5, %c1_i32, %c16_i32 : i32
    %7 = vector.broadcast %6 : i32 to vector<32x1xi32>
    %8 = arith.remsi %4, %7 : vector<32x1xi32>
    %c0_i32_3 = arith.constant 0 : i32
    %9 = vector.broadcast %c0_i32_3 : i32 to vector<32x1xi32>
    %10 = arith.cmpi ne, %8, %9 : vector<32x1xi32>
    %c0_i32_4 = arith.constant 0 : i32
    %11 = vector.broadcast %c0_i32_4 : i32 to vector<32x1xi32>
    %12 = arith.cmpi slt, %8, %11 : vector<32x1xi32>
    %c0_i32_5 = arith.constant 0 : i32
    %13 = arith.cmpi slt, %6, %c0_i32_5 : i32
    %14 = vector.broadcast %13 : i1 to vector<32x1xi1>
    %15 = vector.broadcast %14 : vector<32x1xi1> to vector<32x1xi1>
    %16 = arith.xori %12, %15 : vector<32x1xi1>
    %17 = arith.andi %16, %10 : vector<32x1xi1>
    %18 = vector.broadcast %6 : i32 to vector<32x1xi32>
    %19 = arith.addi %8, %18 : vector<32x1xi32>
    %20 = arith.select %17, %19, %8 : vector<32x1xi1>, vector<32x1xi32>
    %c15_i32 = arith.constant 15 : i32
    %21 = vector.broadcast %c15_i32 : i32 to vector<32x1xi32>
    %22 = arith.cmpi eq, %20, %21 : vector<32x1xi32>
    %c0_6 = arith.constant 0 : index
    %c0_7 = arith.constant 0 : index
    %23 = vector.load %arg8[%c0_6, %c0_7] : memref<32x128xf32, #tpu.memory_space<vmem>>, vector<32x128xf32>
    %cst_8 = arith.constant 0.000000e+00 : f32
    %24 = vector.shape_cast %22 : vector<32x1xi1> to vector<32x1xi1>
    %25 = vector.broadcast %24 : vector<32x1xi1> to vector<32x128xi1>
    %26 = vector.broadcast %cst_8 : f32 to vector<32x128xf32>
    %27 = arith.select %25, %26, %23 : vector<32x128xi1>, vector<32x128xf32>
    %c0_9 = arith.constant 0 : index
    %c0_10 = arith.constant 0 : index
    %28 = vector.load %arg0[%c0_9, %c0_10] : memref<32x128xf32, #tpu.memory_space<vmem>>, vector<32x128xf32>
    %29 = tpu.concatenate %28, %27 in 1 : vector<32x128xf32>, vector<32x128xf32> -> vector<32x256xf32>
    %c0_11 = arith.constant 0 : index
    %c0_12 = arith.constant 0 : index
    %30 = vector.load %arg1[%c0_11, %c0_12] : memref<256x256xf32, #tpu.memory_space<vmem>>, vector<256x256xf32>
    %cst_13 = arith.constant dense<0.000000e+00> : vector<32x256xf32>
    %31 = tpu.matmul %29, %30, %cst_13 {dimension_numbers = #tpu.dot_dimension_numbers<[1], [0], [0], [1], [0, 0, 1, 1], [], []>} : vector<32x256xf32>, vector<256x256xf32>, vector<32x256xf32> -> vector<32x256xf32>
    %cst_14 = arith.constant dense<0.000000e+00> : vector<256xf32>
    %32 = vector.multi_reduction <add>, %31, %cst_14 [0] : vector<32x256xf32> to vector<256xf32>
    %33 = vector.shape_cast %32 : vector<256xf32> to vector<1x256xf32>
    %34 = arith.mulf %31, %31 : vector<32x256xf32>
    %cst_15 = arith.constant dense<0.000000e+00> : vector<256xf32>
    %35 = vector.multi_reduction <add>, %34, %cst_15 [0] : vector<32x256xf32> to vector<256xf32>
    %36 = vector.shape_cast %35 : vector<256xf32> to vector<1x256xf32>
    %c0_16 = arith.constant 0 : index
    %c0_17 = arith.constant 0 : index
    %37 = vector.load %arg2[%c0_16, %c0_17] : memref<256x4xf32, #tpu.memory_space<vmem>>, vector<256x4xf32>
    %cst_18 = arith.constant dense<0.000000e+00> : vector<1x4xf32>
    %38 = tpu.matmul %33, %37, %cst_18 {dimension_numbers = #tpu.dot_dimension_numbers<[1], [0], [0], [1], [0, 0, 1, 1], [], []>} : vector<1x256xf32>, vector<256x4xf32>, vector<1x4xf32> -> vector<1x4xf32>
    %c0_19 = arith.constant 0 : index
    %c0_20 = arith.constant 0 : index
    %39 = vector.load %arg3[%c0_19, %c0_20] : memref<4x256xf32, #tpu.memory_space<vmem>>, vector<4x256xf32>
    %cst_21 = arith.constant dense<0.000000e+00> : vector<1x256xf32>
    %40 = tpu.matmul %38, %39, %cst_21 {dimension_numbers = #tpu.dot_dimension_numbers<[1], [0], [0], [1], [0, 0, 1, 1], [], []>} : vector<1x4xf32>, vector<4x256xf32>, vector<1x256xf32> -> vector<1x256xf32>
    %c0_22 = arith.constant 0 : index
    %c0_23 = arith.constant 0 : index
    %41 = vector.load %arg2[%c0_22, %c0_23] : memref<256x4xf32, #tpu.memory_space<vmem>>, vector<256x4xf32>
    %cst_24 = arith.constant dense<0.000000e+00> : vector<1x4xf32>
    %42 = tpu.matmul %36, %41, %cst_24 {dimension_numbers = #tpu.dot_dimension_numbers<[1], [0], [0], [1], [0, 0, 1, 1], [], []>} : vector<1x256xf32>, vector<256x4xf32>, vector<1x4xf32> -> vector<1x4xf32>
    %c0_25 = arith.constant 0 : index
    %c0_26 = arith.constant 0 : index
    %43 = vector.load %arg3[%c0_25, %c0_26] : memref<4x256xf32, #tpu.memory_space<vmem>>, vector<4x256xf32>
    %cst_27 = arith.constant dense<0.000000e+00> : vector<1x256xf32>
    %44 = tpu.matmul %42, %43, %cst_27 {dimension_numbers = #tpu.dot_dimension_numbers<[1], [0], [0], [1], [0, 0, 1, 1], [], []>} : vector<1x4xf32>, vector<4x256xf32>, vector<1x256xf32> -> vector<1x256xf32>
    %45 = arith.mulf %40, %40 : vector<1x256xf32>
    %46 = arith.subf %44, %45 : vector<1x256xf32>
    %47 = vector.broadcast %40 : vector<1x256xf32> to vector<32x256xf32>
    %48 = arith.subf %31, %47 : vector<32x256xf32>
    %cst_28 = arith.constant 9.99999974E-6 : f32
    %49 = vector.broadcast %cst_28 : f32 to vector<1x256xf32>
    %50 = arith.addf %46, %49 : vector<1x256xf32>
    %51 = math.rsqrt %50 : vector<1x256xf32>
    %52 = vector.broadcast %51 : vector<1x256xf32> to vector<32x256xf32>
    %53 = arith.mulf %48, %52 : vector<32x256xf32>
    %c0_29 = arith.constant 0 : index
    %c0_30 = arith.constant 0 : index
    %54 = vector.load %arg4[%c0_29, %c0_30] : memref<1x256xf32, #tpu.memory_space<vmem>>, vector<1x256xf32>
    %55 = vector.broadcast %54 : vector<1x256xf32> to vector<32x256xf32>
    %56 = arith.mulf %53, %55 : vector<32x256xf32>
    %c0_31 = arith.constant 0 : index
    %c0_32 = arith.constant 0 : index
    %57 = vector.load %arg5[%c0_31, %c0_32] : memref<1x256xf32, #tpu.memory_space<vmem>>, vector<1x256xf32>
    %58 = vector.broadcast %57 : vector<1x256xf32> to vector<32x256xf32>
    %59 = arith.addf %56, %58 : vector<32x256xf32>
    %c0_33 = arith.constant 0 : index
    %60 = memref.load %arg6[%c0_33] : memref<1xf32, #tpu.memory_space<smem>>
    %cst_34 = arith.constant 0.000000e+00 : f32
    %61 = vector.broadcast %cst_34 : f32 to vector<32x256xf32>
    %62 = arith.cmpf ogt, %59, %61 : vector<32x256xf32>
    %63 = vector.broadcast %60 : f32 to vector<32x256xf32>
    %64 = arith.mulf %63, %59 : vector<32x256xf32>
    %65 = arith.select %62, %59, %64 : vector<32x256xi1>, vector<32x256xf32>
    %c0_35 = arith.constant 0 : index
    %c0_36 = arith.constant 0 : index
    %66 = vector.load %arg7[%c0_35, %c0_36] : memref<32x256xf32, #tpu.memory_space<vmem>>, vector<32x256xf32>
    tpu.vector_store %arg7[%c0_35, %c0_36], %65 {strides = array<i32>} : memref<32x256xf32, #tpu.memory_space<vmem>>, vector<32x256xf32>,
    return
  }
}

</mosaic_0001>

<bundles_post_ra>
// kernel: tpu_custom_call.1
= control target key start
LH: loop header
LB: loop body
LE: loop exit
PB: predicated region body
PF: predicated region fallthrough
CT: control target
= control target key end

     0   :  { %13 = vsyncpa [#allocation5], 0  ;;  %s1403_s0 = inlined_call_operand.vmem [shape: f32[32,128], index: 0, kind: input, shape index: {}]   ;;  %s1404_s1 = inlined_call_operand.hbm [shape: f32[256,256], index: 1, kind: input, shape index: {}]   ;;  %s1405_s2 = inlined_call_operand.vmem [shape: f32[256,4], index: 2, kind: input, shape index: {}]   ;;  %s1406_s3 = inlined_call_operand.vmem [shape: f32[4,256], index: 3, kind: input, shape index: {}]   ;;  %s1407_s4 = inlined_call_operand.vmem [shape: f32[1,256], index: 4, kind: input, shape index: {}]   ;;  %s1408_s5 = inlined_call_operand.vmem [shape: f32[1,256], index: 5, kind: input, shape index: {}]   ;;  %s1409_s6 = inlined_call_operand.<no memory space> [shape: f32[1], index: 6, kind: input, shape index: {}]   ;;  %s1410_s7 = inlined_call_operand.hbm [shape: f32[32,256], index: 7, kind: output, shape index: {}]  }
   0x1   :  { %14 = vsyncpa [#allocation6], 0  ;;  %s1053_s24 = smov [#allocation4]   ;;  %s1005_s28 = scalar_lea.hbm %s1404_s1, 8192 }
   0x2   :  { %s22_s25 = sshll.u32 %s1053_s24, 4  ;;  %p1006_p0 = scmp.ne.s32.totalorder %s1404_s1, %s1005_s28  ;;  %s23_s25 = int_to_ptr.vmem [resolvable:$true] %s22_s25 }
   0x3   :  { %p1009_p1 = scmp.lt.u32.totalorder %s1005_s28, %s1404_s1 }
   0x5   :  { %p1011_p2 = pnand %p1009_p1, %p1006_p0 }
   0x7   :  { %1014 = shalt.err (!%p1011_p2)
}
   0x8   :  { %s1015_s10 = scalar_lea.vmem %s23_s25, 8192  ;;  %p1020_p4 = scmp.lt.s32.totalorder %s23_s25, %s23_s25 }
   0x9   :  { %p1016_p3 = scmp.ne.s32.totalorder %s23_s25, %s1015_s10  ;;  %p1021_p5 = scmp.lt.s32.totalorder %s1015_s10, %s1015_s10 }
   0xb   :  { %p1022_p6 = por %p1021_p5, %p1020_p4 }
   0xd   :  { %p1023_p7 = pnand %p1022_p6, %p1016_p3 }
   0xf   :  { %1026 = shalt.err (!%p1023_p7)
}
  0x10   :  { %s1054_s11 = smov 256   ;;  %s1055_s12 = smov 16  }
  0x11   :  { %28 = dma.hbm_to_vmem [thread:$0]  %s1404_s1, 8192, %s23_s25, [#allocation5], %s1054_s11, %s1054_s11, %s1055_s12  }
  0x12   :  { %1049 = dma.done.wait [#allocation5], 8192  }
  0x13   :  { %1050 = vsyncadd [#allocation5], 4294959104  ;;  %v1056_v0 = vmov 0.0   ;;  %v129_v1 = vld [vmem:[#allocation4 + $0x8] sm:$0xff]  ;;  %v131_v2 = vld [vmem:[#allocation4 + $0x18] sm:$0xff]  ;;  %vm434_vm2 = vcmask 1043456  }
  0x14   :  { %50 = vst [vmem:[#allocation2 + $0x1f] sm:$0x1] %v1056_v0  ;;  %v128_v3 = vld [vmem:[#allocation4] sm:$0xff]  ;;  %v867_v4 = vpack.c.bf16 %v131_v2, %v129_v1  ;;  %v130_v5 = vld [vmem:[#allocation4 + $0x10] sm:$0xff]  ;;  %v133_v6 = vld [vmem:[#allocation4 + $0x28] sm:$0xff]  ;;  %vm430_vm3 = vcmask 31744  }
  0x15   :  { %v135_v7 = vld [vmem:[#allocation4 + $0x38] sm:$0xff]  ;;  %v869_v8 = vpack.c.bf16 %v130_v5, %v128_v3  ;;  %v132_v10 = vld [vmem:[#allocation4 + $0x20] sm:$0xff]  ;;  %v134_v11 = vld [vmem:[#allocation4 + $0x30] sm:$0xff] }
  0x16   :  { %v871_v9 = vpack.c.bf16 %v135_v7, %v133_v6  ;;  %v137_v12 = vld [vmem:[#allocation4 + $0x48] sm:$0xff]  ;;  %868 = vmatprep.subr.bf16.mxu0 %v867_v4  ;;  %v139_v13 = vld [vmem:[#allocation4 + $0x58] sm:$0xff]  ;;  %v873_v14 = vpack.c.bf16 %v134_v11, %v132_v10  ;;  %v136_v16 = vld [vmem:[#allocation4 + $0x40] sm:$0xff] }
  0x17   :  { %870 = vmatpush1.bf16.msra.mxu0 %v869_v8  ;;  %v875_v15 = vpack.c.bf16 %v139_v13, %v137_v12  ;;  %v138_v17 = vld [vmem:[#allocation4 + $0x50] sm:$0xff]  ;;  %v141_v18 = vld [vmem:[#allocation4 + $0x68] sm:$0xff]  ;;  %v143_v19 = vld [vmem:[#allocation4 + $0x78] sm:$0xff] }
  0x18   :  { %872 = vmatprep.subr.bf16.mxu0 %v871_v9  ;;  %v877_v20 = vpack.c.bf16 %v138_v17, %v136_v16  ;;  %v879_v21 = vpack.c.bf16 %v143_v19, %v141_v18  ;;  %v140_v22 = vld [vmem:[#allocation4 + $0x60] sm:$0xff]  ;;  %v142_v23 = vld [vmem:[#allocation4 + $0x70] sm:$0xff]  ;;  %v145_v24 = vld [vmem:[#allocation4 + $0x88] sm:$0xff] }
  0x19   :  { %v147_v25 = vld [vmem:[#allocation4 + $0x98] sm:$0xff]  ;;  %v881_v26 = vpack.c.bf16 %v142_v23, %v140_v22  ;;  %v144_v28 = vld [vmem:[#allocation4 + $0x80] sm:$0xff]  ;;  %v146_v29 = vld [vmem:[#allocation4 + $0x90] sm:$0xff] }
  0x1a   :  { %v883_v27 = vpack.c.bf16 %v147_v25, %v145_v24  ;;  %v149_v30 = vld [vmem:[#allocation4 + $0xa8] sm:$0xff]  ;;  %v151_v31 = vld [vmem:[#allocation4 + $0xb8] sm:$0xff]  ;;  %v885_v32 = vpack.c.bf16 %v146_v29, %v144_v28  ;;  %v148_v34 = vld [vmem:[#allocation4 + $0xa0] sm:$0xff] }
  0x1b   :  { %874 = vmatpush1.bf16.msra.mxu0 %v873_v14  ;;  %v887_v33 = vpack.c.bf16 %v151_v31, %v149_v30  ;;  %v150_v35 = vld [vmem:[#allocation4 + $0xb0] sm:$0xff]  ;;  %v153_v36 = vld [vmem:[#allocation4 + $0xc8] sm:$0xff]  ;;  %v155_v37 = vld [vmem:[#allocation4 + $0xd8] sm:$0xff]  ;;  %v51_v31 = vlaneseq }
  0x1c   :  { %876 = vmatprep.subr.bf16.mxu0 %v875_v15  ;;  %v889_v38 = vpack.c.bf16 %v150_v35, %v148_v34  ;;  %v891_v39 = vpack.c.bf16 %v155_v37, %v153_v36  ;;  %v152_v40 = vld [vmem:[#allocation4 + $0xc0] sm:$0xff]  ;;  %v154_v41 = vld [vmem:[#allocation4 + $0xd0] sm:$0xff]  ;;  %v157_v43 = vld [vmem:[#allocation4 + $0xe8] sm:$0xff] }
  0x1d   :  { %v42_v42 = vld [vmem:[%s1403_s0 + $0x1] sm:$0xff]  ;;  %v159_v44 = vld [vmem:[#allocation4 + $0xf8] sm:$0xff]  ;;  %v1120_v45 = vld [vmem:[%s1403_s0 + $0x9] sm:$0xff]  ;;  %v893_v48 = vpack.c.bf16 %v154_v41, %v152_v40 }
  0x1e   :  { %256 = vmatprep.mubr.f32.mxu0 %v42_v42  ;;  %v156_v46 = vld [vmem:[#allocation4 + $0xe0] sm:$0xff]  ;;  %v1125_v47 = vld [vmem:[%s1403_s0 + $0x11] sm:$0xff]  ;;  %v45_v50 = vld [vmem:[%s1403_s0 + $0x19] sm:$0x7f]  ;;  %v895_v52 = vpack.c.bf16 %v159_v44, %v157_v43 }
  0x1f   :  { %878 = vmatpush1.bf16.msra.mxu0 %v877_v20  ;;  %v158_v49 = vld [vmem:[#allocation4 + $0xf0] sm:$0xff]  ;;  %v341_v51 = vld [vmem:[%s1405_s2 + $0x80] sm:$0xff]  ;;  %49 = vst [vmem:[#allocation2 + $0x18] sm:$0x7f] %v45_v50  ;;  %v342_v53 = vld [vmem:[%s1405_s2 + $0x88] sm:$0xff] }
  0x20   :  { %880 = vmatprep.subr.bf16.mxu0 %v879_v21  ;;  %v325_v54 = vld [vmem:[%s1405_s2] sm:$0xff]  ;;  %v326_v55 = vld [vmem:[%s1405_s2 + $0x8] sm:$0xff]  ;;  %v163_v57 = vld [vmem:[#allocation4 + $0x118] sm:$0xff]  ;;  %v1142_v58 = vpack.c.bf16 %v342_v53, %v341_v51  ;;  %v897_v60 = vpack.c.bf16 %v158_v49, %v156_v46 }
  0x21   :  { %v161_v56 = vld [vmem:[#allocation4 + $0x108] sm:$0xff]  ;;  %v1144_v59 = vpack.c.bf16 %v326_v55, %v325_v54  ;;  %v160_v62 = vld [vmem:[#allocation4 + $0x100] sm:$0xff]  ;;  %v162_v63 = vld [vmem:[#allocation4 + $0x110] sm:$0xff] }
  0x22   :  { %932 = vmatprep.subr.bf16.mxu1 %v1142_v58  ;;  %v899_v61 = vpack.c.bf16 %v163_v57, %v161_v56  ;;  %v165_v1 = vld [vmem:[#allocation4 + $0x128] sm:$0xff]  ;;  %v167_v2 = vld [vmem:[#allocation4 + $0x138] sm:$0xff]  ;;  %v901_v3 = vpack.c.bf16 %v162_v63, %v160_v62  ;;  %v164_v5 = vld [vmem:[#allocation4 + $0x120] sm:$0xff] }
  0x23   :  { %882 = vmatpush1.bf16.msra.mxu0 %v881_v26  ;;  %934 = vmatpush3.bf16.msra.mxu1 %v1144_v59  ;;  %v903_v4 = vpack.c.bf16 %v167_v2, %v165_v1  ;;  %v166_v6 = vld [vmem:[#allocation4 + $0x130] sm:$0xff]  ;;  %v169_v7 = vld [vmem:[#allocation4 + $0x148] sm:$0xff]  ;;  %v171_v8 = vld [vmem:[#allocation4 + $0x158] sm:$0xff] }
  0x24   :  { %884 = vmatprep.subr.bf16.mxu0 %v883_v27  ;;  %v905_v9 = vpack.c.bf16 %v166_v6, %v164_v5  ;;  %v907_v10 = vpack.c.bf16 %v171_v8, %v169_v7  ;;  %v168_v11 = vld [vmem:[#allocation4 + $0x140] sm:$0xff]  ;;  %v170_v12 = vld [vmem:[#allocation4 + $0x150] sm:$0xff]  ;;  %v173_v13 = vld [vmem:[#allocation4 + $0x168] sm:$0xff] }
  0x25   :  { %v175_v14 = vld [vmem:[#allocation4 + $0x178] sm:$0xff]  ;;  %v909_v15 = vpack.c.bf16 %v170_v12, %v168_v11  ;;  %v172_v17 = vld [vmem:[#allocation4 + $0x160] sm:$0xff]  ;;  %v174_v18 = vld [vmem:[#allocation4 + $0x170] sm:$0xff] }
  0x26   :  { %v911_v16 = vpack.c.bf16 %v175_v14, %v173_v13  ;;  %v177_v19 = vld [vmem:[#allocation4 + $0x188] sm:$0xff]  ;;  %v179_v20 = vld [vmem:[#allocation4 + $0x198] sm:$0xff]  ;;  %v913_v21 = vpack.c.bf16 %v174_v18, %v172_v17  ;;  %v176_v23 = vld [vmem:[#allocation4 + $0x180] sm:$0xff] }
  0x27   :  { %886 = vmatpush1.bf16.msra.mxu0 %v885_v32  ;;  %v915_v22 = vpack.c.bf16 %v179_v20, %v177_v19  ;;  %v178_v24 = vld [vmem:[#allocation4 + $0x190] sm:$0xff]  ;;  %v181_v25 = vld [vmem:[#allocation4 + $0x1a8] sm:$0xff]  ;;  %v183_v26 = vld [vmem:[#allocation4 + $0x1b8] sm:$0xff] }
  0x28   :  { %888 = vmatprep.subr.bf16.mxu0 %v887_v33  ;;  %v917_v27 = vpack.c.bf16 %v178_v24, %v176_v23  ;;  %v919_v28 = vpack.c.bf16 %v183_v26, %v181_v25  ;;  %v180_v29 = vld [vmem:[#allocation4 + $0x1a0] sm:$0xff]  ;;  %v182_v30 = vld [vmem:[#allocation4 + $0x1b0] sm:$0xff]  ;;  %v185_v32 = vld [vmem:[#allocation4 + $0x1c8] sm:$0xff] }
  0x29   :  { %v187_v33 = vld [vmem:[#allocation4 + $0x1d8] sm:$0xff]  ;;  %v921_v34 = vpack.c.bf16 %v182_v30, %v180_v29  ;;  %v184_v36 = vld [vmem:[#allocation4 + $0x1c0] sm:$0xff]  ;;  %v186_v37 = vld [vmem:[#allocation4 + $0x1d0] sm:$0xff] }
  0x2a   :  { %v923_v35 = vpack.c.bf16 %v187_v33, %v185_v32  ;;  %v191_v40 = vld [vmem:[#allocation4 + $0x1f8] sm:$0xff]  ;;  %v925_v41 = vpack.c.bf16 %v186_v37, %v184_v36  ;;  %v188_v43 = vld [vmem:[#allocation4 + $0x1e0] sm:$0xff]  ;;  %v190_v44 = vld [vmem:[#allocation4 + $0x1f0] sm:$0xff] }
  0x2b   :  { %890 = vmatpush1.bf16.msra.mxu0 %v889_v38  ;;  %v1148_v38 = vshrl.u32 %v51_v31, 7  ;;  %v124_v50 = vld [vmem:[%s1403_s0] sm:$0xff]  ;;  %v126_v54 = vld [vmem:[%s1403_s0 + $0x10] sm:$0xff]  ;;  %v111_v55 = vld [vmem:[#allocation2 + $0x18] sm:$0xff] }
  0x2c   :  { %892 = vmatprep.subr.bf16.mxu0 %v891_v39  ;;  %v189_v39 = vld [vmem:[#allocation4 + $0x1e8] sm:$0xff]  ;;  %v343_v56 = vld [vmem:[%s1405_s2 + $0x90] sm:$0xff]  ;;  %v345_v63 = vld [vmem:[%s1405_s2 + $0xa0] sm:$0xff] }
  0x2d   :  { %v927_v42 = vpack.c.bf16 %v191_v40, %v189_v39  ;;  %v53_v46 = vadd.s32 8, %v1148_v38  ;;  %v55_v51 = vadd.s32 24, %v1148_v38  ;;  %v346_v1 = vld [vmem:[%s1405_s2 + $0xa8] sm:$0xff]  ;;  %v347_v6 = vld [vmem:[%s1405_s2 + $0xb0] sm:$0xff]  ;;  %v348_v7 = vld [vmem:[%s1405_s2 + $0xb8] sm:$0xff] }
  0x2e   :  { %v1190_v2 = vpack.c.bf16 %v346_v1, %v345_v63  ;;  %v1208_v8 = vpack.c.bf16 %v348_v7, %v347_v6  ;;  %v349_v12 = vld [vmem:[%s1405_s2 + $0xc0] sm:$0xff]  ;;  %v350_v13 = vld [vmem:[%s1405_s2 + $0xc8] sm:$0xff]  ;;  %v351_v18 = vld [vmem:[%s1405_s2 + $0xd0] sm:$0xff] }
  0x2f   :  { %894 = vmatpush1.bf16.msra.mxu0 %v893_v48  ;;  %v929_v48 = vpack.c.bf16 %v190_v44, %v188_v43  ;;  %v67_v49 = vand.u32 15, %v53_v46  ;;  %v81_v53 = vand.u32 15, %v55_v51  ;;  %v1226_v14 = vpack.c.bf16 %v350_v13, %v349_v12  ;;  %v352_v19 = vld [vmem:[%s1405_s2 + $0xd8] sm:$0xff]  ;;  %v353_v24 = vld [vmem:[%s1405_s2 + $0xe0] sm:$0xff]  ;;  %v354_v25 = vld [vmem:[%s1405_s2 + $0xe8] sm:$0xff] }
  0x30   :  { %896 = vmatprep.subr.bf16.mxu0 %v895_v52  ;;  %v125_v52 = vld [vmem:[%s1403_s0 + $0x8] sm:$0xff]  ;;  %v1244_v20 = vpack.c.bf16 %v352_v19, %v351_v18  ;;  %v1262_v26 = vpack.c.bf16 %v354_v25, %v353_v24  ;;  %v355_v30 = vld [vmem:[%s1405_s2 + $0xf0] sm:$0xff]  ;;  %v356_v31 = vld [vmem:[%s1405_s2 + $0xf8] sm:$0xff] }
  0x31   :  { %vm795_vm0 = vcmp.ne.s32.totalorder %v67_v49, 15  ;;  %vm796_vm1 = vcmp.ne.s32.totalorder %v81_v53, 15  ;;  %v339_v32 = vld [vmem:[%s1405_s2 + $0x70] sm:$0xff]  ;;  %v1283_v33 = vpack.c.bf16 %v356_v31, %v355_v30  ;;  %v1295_v36 = vld [vmem:[%s1406_s3] sm:$0xff] }
  0x32   :  { %v1299_v37 = vcombine.high %v1295_v36, %v1295_v36 }
  0x33   :  { %898 = vmatpush1.bf16.msra.mxu0 %v897_v60  ;;  %v327_v60 = vld [vmem:[%s1405_s2 + $0x10] sm:$0xff] }
  0x34   :  { %900 = vmatprep.subr.bf16.mxu0 %v899_v61  ;;  %v328_v61 = vld [vmem:[%s1405_s2 + $0x18] sm:$0xff] }
  0x35   :  { %v1180_v62 = vpack.c.bf16 %v328_v61, %v327_v60 }
  0x37   :  { %902 = vmatpush1.bf16.msra.mxu0 %v901_v3  ;;  %v329_v3 = vld [vmem:[%s1405_s2 + $0x20] sm:$0xff] }
  0x38   :  { %904 = vmatprep.subr.bf16.mxu0 %v903_v4  ;;  %v330_v4 = vld [vmem:[%s1405_s2 + $0x28] sm:$0xff] }
  0x39   :  { %v1198_v5 = vpack.c.bf16 %v330_v4, %v329_v3 }
  0x3b   :  { %906 = vmatpush1.bf16.msra.mxu0 %v905_v9  ;;  %v331_v9 = vld [vmem:[%s1405_s2 + $0x30] sm:$0xff] }
  0x3c   :  { %908 = vmatprep.subr.bf16.mxu0 %v907_v10  ;;  %v332_v10 = vld [vmem:[%s1405_s2 + $0x38] sm:$0xff] }
  0x3d   :  { %v1216_v11 = vpack.c.bf16 %v332_v10, %v331_v9 }
  0x3f   :  { %910 = vmatpush1.bf16.msra.mxu0 %v909_v15  ;;  %v333_v15 = vld [vmem:[%s1405_s2 + $0x40] sm:$0xff] }
  0x40   :  { %912 = vmatprep.subr.bf16.mxu0 %v911_v16  ;;  %v334_v16 = vld [vmem:[%s1405_s2 + $0x48] sm:$0xff] }
  0x41   :  { %v1234_v17 = vpack.c.bf16 %v334_v16, %v333_v15 }
  0x43   :  { %914 = vmatpush1.bf16.msra.mxu0 %v913_v21  ;;  %v335_v21 = vld [vmem:[%s1405_s2 + $0x50] sm:$0xff] }
  0x44   :  { %916 = vmatprep.subr.bf16.mxu0 %v915_v22  ;;  %v336_v22 = vld [vmem:[%s1405_s2 + $0x58] sm:$0xff] }
  0x45   :  { %v1252_v23 = vpack.c.bf16 %v336_v22, %v335_v21 }
  0x47   :  { %918 = vmatpush1.bf16.msra.mxu0 %v917_v27  ;;  %v337_v27 = vld [vmem:[%s1405_s2 + $0x60] sm:$0xff] }
  0x48   :  { %920 = vmatprep.subr.bf16.mxu0 %v919_v28  ;;  %v338_v28 = vld [vmem:[%s1405_s2 + $0x68] sm:$0xff] }
  0x49   :  { %v1270_v29 = vpack.c.bf16 %v338_v28, %v337_v27 }
  0x4b   :  { %922 = vmatpush1.bf16.msra.mxu0 %v921_v34  ;;  %v340_v34 = vld [vmem:[%s1405_s2 + $0x78] sm:$0xff] }
  0x4c   :  { %924 = vmatprep.subr.bf16.mxu0 %v923_v35  ;;  %v1288_v35 = vpack.c.bf16 %v340_v34, %v339_v32 }
  0x4f   :  { %926 = vmatpush1.bf16.msra.mxu0 %v925_v41 }
  0x50   :  { %928 = vmatprep.subr.bf16.mxu0 %v927_v42 }
  0x53   :  { %930 = vmatpush1.bf16.msra.mxu0 %v929_v48 }
  0x56   :  { %257 = vmatmul.mubr.f32.vlgmr.msra.gmra.mrb[0].mxu0 %v124_v50 }
  0x57   :  { %786 = vmatprep.mubr.msk.f32.mxu0 %vm795_vm0, %v1120_v45  ;;  %v127_v45 = vld [vmem:[%s1403_s0 + $0x18] sm:$0xff] }
  0x5a   :  { %263 = vmatmul.mubr.f32.gmra.mrb[2].mxu0 %v125_v52 }
  0x5b   :  { %268 = vmatprep.mubr.f32.mxu0 %v1125_v47  ;;  %v344_v47 = vld [vmem:[%s1405_s2 + $0x98] sm:$0xff] }
  0x5c   :  { %v1172_v57 = vpack.c.bf16 %v344_v47, %v343_v56 }
  0x5e   :  { %269 = vmatmul.mubr.f32.gmra.mrb[4].mxu0 %v126_v54  ;;  %936 = vmatprep.subr.bf16.mxu1 %v1172_v57 }
  0x5f   :  { %788 = vmatprep.mubr.msk.f32.mxu0 %vm796_vm1, %v111_v55  ;;  %938 = vmatpush3.bf16.msra.mxu1 %v1180_v62 }
  0x60   :  { %940 = vmatprep.subr.bf16.mxu1 %v1190_v2 }
  0x62   :  { %275 = vmatmul.mubr.f32.gmra.mrb[6].mxu0 %v127_v45 }
  0x63   :  { %942 = vmatpush3.bf16.msra.mxu1 %v1198_v5 }
  0x64   :  { %944 = vmatprep.subr.bf16.mxu1 %v1208_v8 }
  0x67   :  { %946 = vmatpush3.bf16.msra.mxu1 %v1216_v11 }
  0x68   :  { %948 = vmatprep.subr.bf16.mxu1 %v1226_v14 }
  0x6b   :  { %950 = vmatpush3.bf16.msra.mxu1 %v1234_v17 }
  0x6c   :  { %952 = vmatprep.subr.bf16.mxu1 %v1244_v20 }
  0x6f   :  { %954 = vmatpush3.bf16.msra.mxu1 %v1252_v23 }
  0x70   :  { %956 = vmatprep.subr.bf16.mxu1 %v1262_v26 }
  0x73   :  { %958 = vmatpush3.bf16.msra.mxu1 %v1270_v29 }
  0x74   :  { %960 = vmatprep.subr.bf16.mxu1 %v1283_v33 }
  0x77   :  { %962 = vmatpush3.bf16.msra.mxu1 %v1288_v35 }
  0x78   :  { %789 = vmatprep.subr.msk.mxu1 %vm434_vm2, %v1299_v37 }
 0x129   :  { %v1303_v39 = vpop.f32.mrb[0].mxu0 }
 0x12a   :  { %v1305_v40 = vpop.f32.mrb[1].mxu0  ;;  %v299_v42 = vmul.f32 %v1303_v39, %v1303_v39 }
 0x12b   :  { %v300_v48 = vmul.f32 %v1305_v40, %v1305_v40 }
 0x12d   :  { %v1307_v41 = vpop.f32.mrb[2].mxu0 }
 0x12e   :  { %v281_v43 = vadd.f32 %v1307_v41, %v1303_v39  ;;  %v301_v44 = vmul.f32 %v1307_v41, %v1307_v41  ;;  %v1315_v46 = vpop.f32.mrb[3].mxu0 }
 0x12f   :  { %v290_v49 = vadd.f32 %v1315_v46, %v1305_v40  ;;  %v302_v50 = vmul.f32 %v1315_v46, %v1315_v46 }
 0x130   :  { %v307_v51 = vadd.f32 %v301_v44, %v299_v42 }
 0x131   :  { %v316_v52 = vadd.f32 %v302_v50, %v300_v48  ;;  %v1323_v53 = vpop.f32.mrb[4].mxu0 }
 0x132   :  { %v282_v54 = vadd.f32 %v281_v43, %v1323_v53  ;;  %v303_v55 = vmul.f32 %v1323_v53, %v1323_v53  ;;  %v1328_v45 = vpop.f32.mrb[5].mxu0 }
 0x133   :  { %v291_v56 = vadd.f32 %v290_v49, %v1328_v45  ;;  %v304_v47 = vmul.f32 %v1328_v45, %v1328_v45 }
 0x134   :  { %v308_v60 = vadd.f32 %v307_v51, %v303_v55 }
 0x135   :  { %v317_v61 = vadd.f32 %v316_v52, %v304_v47  ;;  %v1333_v63 = vpop.f32.mrb[6].mxu0 }
 0x136   :  { %v283_v1 = vadd.f32 %v282_v54, %v1333_v63  ;;  %v305_v3 = vmul.f32 %v1333_v63, %v1333_v63  ;;  %v1338_v4 = vpop.f32.mrb[7].mxu0 }
 0x137   :  { %v292_v6 = vadd.f32 %v291_v56, %v1338_v4  ;;  %v306_v7 = vmul.f32 %v1338_v4, %v1338_v4 }
 0x138   :  { %v284_v9 = vrot.slane %v283_v1, 4  ;;  %v309_v10 = vadd.f32 %v308_v60, %v305_v3 }
 0x139   :  { %v293_v12 = vrot.slane %v292_v6, 4  ;;  %v318_v13 = vadd.f32 %v317_v61, %v306_v7 }
 0x13a   :  { %v285_v15 = vadd.f32 %v284_v9, %v283_v1  ;;  %v743_v9 = vstv %s1409_s6 }
 0x13b   :  { %v294_v16 = vadd.f32 %v293_v12, %v292_v6  ;;  %v319_v30 = vrot.slane %v318_v13, 4 }
 0x13c   :  { %v286_v18 = vrot.slane %v285_v15, 2 }
 0x13d   :  { %v295_v19 = vrot.slane %v294_v16, 2  ;;  %v320_v31 = vadd.f32 %v319_v30, %v318_v13 }
 0x13e   :  { %v287_v21 = vadd.f32 %v286_v18, %v285_v15 }
 0x13f   :  { %v296_v22 = vadd.f32 %v295_v19, %v294_v16  ;;  %v321_v32 = vrot.slane %v320_v31, 2 }
 0x140   :  { %v288_v24 = vrot.slane %v287_v21, 1 }
 0x141   :  { %v297_v25 = vrot.slane %v296_v22, 1  ;;  %v322_v34 = vadd.f32 %v321_v32, %v320_v31 }
 0x142   :  { %v289_v28 = vadd.f32 %v288_v24, %v287_v21 }
 0x143   :  { %v298_v27 = vadd.f32 %v297_v25, %v296_v22  ;;  %v323_v42 = vrot.slane %v322_v34, 1 }
 0x145   :  { %421 = vmatprep.mubr.f32.mxu1 %v298_v27  ;;  %v324_v49 = vadd.f32 %v323_v42, %v322_v34 }
 0x146   :  { %422 = vmatmul.mubr.f32.vlgmr.msra.gmra.mrb[0].mxu1 %v289_v28 }
 0x147   :  { %790 = vmatpush1.msk.msra.mxu1 %vm434_vm2, %v1295_v36  ;;  %503 = vmatprep.mubr.f32.mxu1 %v1056_v0 }
 0x148   :  { %964 = vmatprep.subr.bf16.mxu1 %v1142_v58  ;;  %v310_v58 = vrot.slane %v309_v10, 4 }
 0x14a   :  { %v311_v50 = vadd.f32 %v310_v58, %v309_v10 }
 0x219   :  { %v829_v43 = vpop.f32.mrb[0].mxu1 }
 0x21a   :  { %v830_v44 = vpop.f32.mrb[1].mxu1 }
 0x21b   :  { %v831_v48 = vadd.f32 %v830_v44, %v829_v43 }
 0x21d   :  { %791 = vmatmul.mubr.msk.f32.vlgmr.msra.gmra.mrb[2].mxu1 %vm430_vm3, %v831_v48 }
 0x21e   :  { %966 = vmatpush3.bf16.msra.mxu1 %v1144_v59  ;;  %574 = vmatprep.mubr.f32.mxu1 %v324_v49  ;;  %v312_v59 = vrot.slane %v311_v50, 2 }
 0x21f   :  { %968 = vmatprep.subr.bf16.mxu1 %v1172_v57 }
 0x220   :  { %v313_v57 = vadd.f32 %v312_v59, %v311_v50 }
 0x222   :  { %970 = vmatpush3.bf16.msra.mxu1 %v1180_v62  ;;  %v314_v62 = vrot.slane %v313_v57, 1 }
 0x223   :  { %972 = vmatprep.subr.bf16.mxu1 %v1190_v2 }
 0x224   :  { %v315_v2 = vadd.f32 %v314_v62, %v313_v57 }
 0x226   :  { %974 = vmatpush3.bf16.msra.mxu1 %v1198_v5  ;;  %v660_v5 = vsub.s32 0, %v1148_v38 }
 0x227   :  { %976 = vmatprep.subr.bf16.mxu1 %v1208_v8 }
 0x22a   :  { %978 = vmatpush3.bf16.msra.mxu1 %v1216_v11 }
 0x22b   :  { %980 = vmatprep.subr.bf16.mxu1 %v1226_v14 }
 0x22e   :  { %982 = vmatpush3.bf16.msra.mxu1 %v1234_v17 }
 0x22f   :  { %984 = vmatprep.subr.bf16.mxu1 %v1244_v20 }
 0x232   :  { %986 = vmatpush3.bf16.msra.mxu1 %v1252_v23 }
 0x233   :  { %988 = vmatprep.subr.bf16.mxu1 %v1262_v26 }
 0x236   :  { %990 = vmatpush3.bf16.msra.mxu1 %v1270_v29 }
 0x237   :  { %992 = vmatprep.subr.bf16.mxu1 %v1283_v33 }
 0x23a   :  { %994 = vmatpush3.bf16.msra.mxu1 %v1288_v35 }
 0x23b   :  { %792 = vmatprep.subr.msk.mxu1 %vm434_vm2, %v1299_v37 }
 0x23d   :  { %575 = vmatmul.mubr.f32.vlgmr.msra.gmra.mrb[4].mxu1 %v315_v2 }
 0x23e   :  { %793 = vmatpush1.msk.msra.mxu1 %vm434_vm2, %v1295_v36  ;;  %647 = vmatprep.mubr.f32.mxu1 %v1056_v0 }
 0x2f0   :  { %v505_v8 = vpop.f32.mrb[2].mxu1 }
 0x2f1   :  { %v661_v11 = vrot.slane %v505_v8, %v660_v5  ;;  %v507_v14 = vpop.f32.mrb[3].mxu1 }
 0x2f2   :  { %v665_v17 = vrot.slane %v507_v14, %v660_v5  ;;  %v655_v54 = vmul.f32 %v507_v14, %v507_v14 }
 0x2f3   :  { %v666_v20 = vsub.f32 %v1303_v39, %v661_v11  ;;  %v668_v23 = vsub.f32 %v1307_v41, %v661_v11  ;;  %v670_v26 = vsub.f32 %v1323_v53, %v661_v11  ;;  %v672_v29 = vsub.f32 %v1333_v63, %v661_v11 }
 0x2f4   :  { %v667_v33 = vsub.f32 %v1305_v40, %v665_v17  ;;  %v669_v35 = vsub.f32 %v1315_v46, %v665_v17  ;;  %v671_v0 = vsub.f32 %v1328_v45, %v665_v17  ;;  %v673_v36 = vsub.f32 %v1338_v4, %v665_v17  ;;  %v694_v46 = vld [vmem:[%s1407_s4] sm:$0x3]  ;;  %s1057_s4 = smov [#allocation7]  }
 0x2f5   :  { %v654_v39 = vmul.f32 %v505_v8, %v505_v8  ;;  %v702_v40 = vsub.s32 1, %v1148_v38  ;;  %v714_v45 = vld [vmem:[%s1408_s5] sm:$0x3]  ;;  %v699_v4 = vrot.slane %v694_v46, %v660_v5  ;;  %s773_s5 = sshll.u32 %s1057_s4, 4  ;;  %s774_s5 = int_to_ptr.vmem [resolvable:$true] %s773_s5 }
 0x2f6   :  { %v719_v7 = vrot.slane %v714_v45, %v660_v5  ;;  %s1027_s6 = scalar_lea.vmem %s774_s5, 1024  ;;  %p1032_p9 = scmp.lt.s32.totalorder %s774_s5, %s774_s5 }
 0x2f7   :  { %v703_v1 = vrot.slane %v694_v46, %v702_v40  ;;  %v723_v6 = vrot.slane %v714_v45, %v702_v40  ;;  %p1028_p8 = scmp.ne.s32.totalorder %s774_s5, %s1027_s6  ;;  %p1033_p10 = scmp.lt.s32.totalorder %s1027_s6, %s1027_s6 }
 0x2f9   :  { %p1034_p11 = por %p1033_p10, %p1032_p9 }
 0x2fb   :  { %p1035_p12 = pnand %p1034_p11, %p1028_p8 }
 0x310   :  { %v864_v37 = vpop.f32.mrb[4].mxu1 }
 0x311   :  { %v865_v51 = vpop.f32.mrb[5].mxu1 }
 0x312   :  { %v866_v52 = vadd.f32 %v865_v51, %v864_v37 }
 0x314   :  { %794 = vmatmul.mubr.msk.f32.vlgmr.msra.gmra.mrb[6].mxu1 %vm430_vm3, %v866_v52 }
 0x3e7   :  { %v649_v41 = vpop.f32.mrb[6].mxu1 }
 0x3e8   :  { %v656_v55 = vsub.f32 %v649_v41, %v654_v39  ;;  %v651_v53 = vpop.f32.mrb[7].mxu1 }
 0x3e9   :  { %v657_v56 = vsub.f32 %v651_v53, %v655_v54 }
 0x3ea   :  { %v674_v47 = vadd.f32 1e-05, %v656_v55 }
 0x3eb   :  { %v675_v60 = vadd.f32 1e-05, %v657_v56 }
 0x3ec   :  { %1001 = vrsqrt.f32 %v674_v47 }
 0x3ed   :  { %1003 = vrsqrt.f32 %v675_v60 }
 0x3f6   :  { %v1002_v61 = vpop.eup %1001 }
 0x3f7   :  { %v1004_v63 = vpop.eup %1003  ;;  %v681_v3 = vrot.slane %v1002_v61, %v660_v5 }
 0x3f8   :  { %v685_v38 = vrot.slane %v1004_v63, %v660_v5 }
 0x3f9   :  { %v686_v10 = vmul.f32 %v681_v3, %v666_v20  ;;  %v688_v12 = vmul.f32 %v681_v3, %v668_v23  ;;  %v690_v13 = vmul.f32 %v681_v3, %v670_v26  ;;  %v692_v15 = vmul.f32 %v681_v3, %v672_v29 }
 0x3fa   :  { %v687_v16 = vmul.f32 %v685_v38, %v667_v33  ;;  %v689_v18 = vmul.f32 %v685_v38, %v669_v35  ;;  %v691_v19 = vmul.f32 %v685_v38, %v671_v0  ;;  %v693_v21 = vmul.f32 %v685_v38, %v673_v36 }
 0x3fb   :  { %v706_v22 = vmul.f32 %v699_v4, %v686_v10  ;;  %v708_v24 = vmul.f32 %v699_v4, %v688_v12  ;;  %v710_v25 = vmul.f32 %v699_v4, %v690_v13  ;;  %v712_v27 = vmul.f32 %v699_v4, %v692_v15 }
 0x3fc   :  { %v707_v28 = vmul.f32 %v703_v1, %v687_v16  ;;  %v709_v30 = vmul.f32 %v703_v1, %v689_v18  ;;  %v711_v31 = vmul.f32 %v703_v1, %v691_v19  ;;  %v713_v32 = vmul.f32 %v703_v1, %v693_v21 }
 0x3fd   :  { %v726_v34 = vadd.f32 %v719_v7, %v706_v22  ;;  %v728_v42 = vadd.f32 %v719_v7, %v708_v24  ;;  %v730_v43 = vadd.f32 %v719_v7, %v710_v25  ;;  %v732_v44 = vadd.f32 %v719_v7, %v712_v27 }
 0x3fe   :  { %v727_v48 = vadd.f32 %v723_v6, %v707_v28  ;;  %v729_v49 = vadd.f32 %v723_v6, %v709_v30  ;;  %v731_v58 = vadd.f32 %v723_v6, %v711_v31  ;;  %v733_v50 = vadd.f32 %v723_v6, %v713_v32 }
 0x3ff   :  { %v744_v59 = vmul.f32 %v743_v9, %v726_v34  ;;  %v746_v57 = vmul.f32 %v743_v9, %v728_v42  ;;  %v748_v62 = vmul.f32 %v743_v9, %v730_v43  ;;  %v750_v2 = vmul.f32 %v743_v9, %v732_v44 }
 0x400   :  { %v745_v5 = vmul.f32 %v743_v9, %v727_v48  ;;  %v747_v8 = vmul.f32 %v743_v9, %v729_v49  ;;  %v749_v11 = vmul.f32 %v743_v9, %v731_v58  ;;  %v751_v14 = vmul.f32 %v743_v9, %v733_v50 }
 0x401   :  { %vm735_vm4 = vcmp.gt.f32.partialorder %v726_v34, 0.0  ;;  %vm736_vm5 = vcmp.gt.f32.partialorder %v727_v48, 0.0  ;;  %vm737_vm6 = vcmp.gt.f32.partialorder %v728_v42, 0.0  ;;  %vm738_vm7 = vcmp.gt.f32.partialorder %v729_v49, 0.0 }
 0x402   :  { %vm739_vm8 = vcmp.gt.f32.partialorder %v730_v43, 0.0  ;;  %vm740_vm9 = vcmp.gt.f32.partialorder %v731_v58, 0.0  ;;  %vm741_vm10 = vcmp.gt.f32.partialorder %v732_v44, 0.0  ;;  %vm742_vm11 = vcmp.gt.f32.partialorder %v733_v50, 0.0 }
 0x403   :  { %v752_v17 = vsel %vm735_vm4, %v726_v34, %v744_v59  ;;  %v753_v20 = vsel %vm736_vm5, %v727_v48, %v745_v5  ;;  %v754_v23 = vsel %vm737_vm6, %v728_v42, %v746_v57  ;;  %v755_v26 = vsel %vm738_vm7, %v729_v49, %v747_v8 }
 0x404   :  { %v756_v29 = vsel %vm739_vm8, %v730_v43, %v748_v62  ;;  %v757_v33 = vsel %vm740_vm9, %v731_v58, %v749_v11  ;;  %v758_v35 = vsel %vm741_vm10, %v732_v44, %v750_v2  ;;  %v759_v0 = vsel %vm742_vm11, %v733_v50, %v751_v14  ;;  %760 = vst [vmem:[#allocation7] sm:$0xff] %v752_v17 }
 0x405   :  { %761 = vst [vmem:[#allocation7 + $0x8] sm:$0xff] %v753_v20  ;;  %762 = vst [vmem:[#allocation7 + $0x10] sm:$0xff] %v754_v23 }
 0x406   :  { %763 = vst [vmem:[#allocation7 + $0x18] sm:$0xff] %v755_v26  ;;  %764 = vst [vmem:[#allocation7 + $0x20] sm:$0xff] %v756_v29 }
 0x407   :  { %765 = vst [vmem:[#allocation7 + $0x28] sm:$0xff] %v757_v33  ;;  %766 = vst [vmem:[#allocation7 + $0x30] sm:$0xff] %v758_v35 }
 0x408   :  { %767 = vst [vmem:[#allocation7 + $0x38] sm:$0xff] %v759_v0 }
 0x409   :  { %1038 = shalt.err (!%p1035_p12)
}
 0x40a   :  { %s1039_s10 = scalar_lea.hbm %s1410_s7, 1024 }
 0x40b   :  { %p1040_p13 = scmp.ne.s32.totalorder %s1410_s7, %s1039_s10  ;;  %p1043_p0 = scmp.lt.u32.totalorder %s1039_s10, %s1410_s7 }
 0x40d   :  { %p1045_p1 = pnand %p1043_p0, %p1040_p13 }
 0x40f   :  { %1048 = shalt.err (!%p1045_p1)
}
 0x410   :  { %779 = dma.vmem_to_hbm [thread:$0]  %s774_s5, 1024, %s1410_s7, [#allocation6], %s1054_s11, %s1054_s11, %s1055_s12  }
 0x411   :  { %1051 = dma.done.wait [#allocation6], 1024  }
 0x412   :  { %1052 = vsyncadd [#allocation6], 4294966272 }
 0x413   :  { %783 = vsyncpa [#allocation5], 1 }
 0x414   :  { %784 = vsyncpa [#allocation6], 1 }

</bundles_post_ra>
